<compile_context>
chip_gen: v6e
topology: v6e:2x2x1
jax: 0.10.0
libtpu: 0.0.40
codegen_flags: <defaults>
</compile_context>

<pallas_src>
import math

import jax
import jax.numpy as jnp
from jax.experimental import pallas as pl
from jax.experimental.pallas import tpu as pltpu


def _round_up(x, m):
    return ((x + m - 1) // m) * m


def sage_mean_kernel(a_ref, inv_ref, xs_ref, xd_ref, w_ref, b_ref, o_ref, acc_ref):
    """Fused SAGEConv('mean') forward.

    Grid = (dst-row tiles i, src-contraction tiles k)   (k last).
    acc_ref is a (tm, 2*Din_p) f32 VMEM scratch:
      left  half = destination ("self") features of this row tile,
      right half = running sum over k of A_tile @ X_src_tile (un-normalized).
    """
    k = pl.program_id(1)
    din = xs_ref.shape[1]  # padded input feature width (static, multiple of 128)

    @pl.when(k == 0)
    def _init():
        acc_ref[:, :din] = xd_ref[...].astype(jnp.float32)
        acc_ref[:, din:] = jnp.zeros((xd_ref.shape[0], din), jnp.float32)

    # Aggregation: int8 0/1 adjacency up-cast to bf16 (VPU, hidden under DMA),
    # bf16 X, single MXU pass, f32 accumulation.
    acc_ref[:, din:] += jnp.dot(a_ref[...].astype(jnp.bfloat16), xs_ref[...],
                                preferred_element_type=jnp.float32)

    @pl.when(k == pl.num_programs(1) - 1)
    def _finalize():
        # Exact f32 mean-normalization (per-dst-row inverse degree), in place so
        # no concatenate / extra VMEM copy is materialized.
        acc_ref[:, din:] = acc_ref[:, din:] * inv_ref[...]
        # Single fused K = 2*Din_p bf16 matmul:
        #   [X_dst | neigh] @ [[W_self^T], [W_neigh^T]]
        h = jnp.dot(acc_ref[...].astype(jnp.bfloat16), w_ref[...],
                    preferred_element_type=jnp.float32)
        o_ref[...] = jnp.maximum(h + b_ref[...], 0.0)


def sage_conv_mean(adj, x, w_neigh_t, w_self_t, b_self, bias, *,
                   inv_deg=None, tm=1024, tk=2048, a_buffers=2,
                   vmem_limit_bytes=48 * 1024 * 1024):
    """SAGEConv 'mean' forward.

    adj        : [N_dst, N_src] raw 0/1 adjacency.  Pass it as int8 and already
                 padded to the tile grid to skip the per-call host pad (cache it
                 upstream in that form for production graphs).
    inv_deg    : optional [N_dst] f32 inverse in-degrees (0 for isolated nodes);
                 computed from adj if None.
    w_*_t      : pre-transposed weights, [Din, Dout].
    """
    n_dst, n_src = adj.shape
    _, din = x.shape
    dout = w_neigh_t.shape[1]

    din_p = _round_up(din, 128)
    dout_p = _round_up(dout, 128)

    # Tile sizes clipped to the (padded) problem size; stay multiples of 128.
    tm = min(tm, _round_up(n_dst, 128))
    tk = min(tk, _round_up(n_src, 128))
    nd_p = _round_up(n_dst, tm)
    ns_p = _round_up(n_src, tk)

    if inv_deg is None:
        deg = adj.astype(jnp.float32).sum(axis=1)
        inv_deg = jnp.where(deg > 0, 1.0 / jnp.maximum(deg, 1.0), 0.0)

    # --- host-side prep (zero padding is numerically exact) -------------------
    if adj.shape == (nd_p, ns_p) and adj.dtype == jnp.int8:
        a_p = adj                                   # zero-copy fast path
    else:
        a_p = jnp.zeros((nd_p, ns_p), jnp.int8).at[:n_dst, :n_src].set(
            adj.astype(jnp.int8))                   # 1 B/elem dominant stream
    inv_p = jnp.zeros((nd_p, 1), jnp.float32).at[:n_dst, 0].set(
        inv_deg.astype(jnp.float32))
    x_bf = x.astype(jnp.bfloat16)
    xs_p = jnp.zeros((ns_p, din_p), jnp.bfloat16).at[:n_src, :din].set(x_bf)
    xd_p = jnp.zeros((nd_p, din_p), jnp.bfloat16).at[:n_dst, :din].set(x_bf)
    # Fused weight: rows [0, din) -> W_self^T, rows [din_p, din_p+din) -> W_neigh^T
    w_cat = jnp.zeros((2 * din_p, dout_p), jnp.float32)
    w_cat = w_cat.at[:din, :dout].set(w_self_t)
    w_cat = w_cat.at[din_p:din_p + din, :dout].set(w_neigh_t)
    w_cat = w_cat.astype(jnp.bfloat16)
    # Pre-add fc_self bias and the module bias parameter (kept f32).
    b_cat = jnp.zeros((1, dout_p), jnp.float32).at[0, :dout].set(b_self + bias)

    grid = (nd_p // tm, ns_p // tk)

    # Optional deeper buffering on the A stream (v7x).  Falls back cleanly if
    # this jax version lacks the pipeline_mode kwarg.
    a_idx = lambda i, k: (i, k)
    if a_buffers is not None and a_buffers != 2:
        try:
            a_spec = pl.BlockSpec((tm, tk), a_idx,
                                  pipeline_mode=pl.Buffered(a_buffers))
        except TypeError:
            a_spec = pl.BlockSpec((tm, tk), a_idx)
    else:
        a_spec = pl.BlockSpec((tm, tk), a_idx)

    flops = 2 * nd_p * ns_p * din_p + 2 * nd_p * (2 * din_p) * dout_p
    bytes_accessed = (nd_p * ns_p * 1                 # A (int8)
                      + grid[0] * ns_p * din_p * 2    # X_src restreamed per row tile
                      + nd_p * din_p * 2              # X_dst (bf16)
                      + nd_p * 4                      # inv_deg
                      + 2 * din_p * dout_p * 2        # W_cat (bf16)
                      + nd_p * dout_p * 4)            # output

    out = pl.pallas_call(
        sage_mean_kernel,
        out_shape=jax.ShapeDtypeStruct((nd_p, dout_p), jnp.float32),
        grid_spec=pltpu.PrefetchScalarGridSpec(
            num_scalar_prefetch=0,
            grid=grid,
            in_specs=[
                a_spec,                                                  # A tile (int8)
                pl.BlockSpec((tm, 1), lambda i, k: (i, 0)),              # inv_deg (k-invariant)
                pl.BlockSpec((tk, din_p), lambda i, k: (k, 0)),          # X_src tile
                pl.BlockSpec((tm, din_p), lambda i, k: (i, 0)),          # X_dst tile (k-invariant)
                pl.BlockSpec((2 * din_p, dout_p), lambda i, k: (0, 0)),  # W_cat (constant)
                pl.BlockSpec((1, dout_p), lambda i, k: (0, 0)),          # fused bias
            ],
            out_specs=pl.BlockSpec((tm, dout_p), lambda i, k: (i, 0)),
            scratch_shapes=[pltpu.VMEM((tm, 2 * din_p), jnp.float32)],
        ),
        compiler_params=pltpu.CompilerParams(
            dimension_semantics=("parallel", "arbitrary"),
            vmem_limit_bytes=vmem_limit_bytes,
        ),
        cost_estimate=pl.CostEstimate(
            flops=flops, transcendentals=0, bytes_accessed=bytes_accessed),
    )(a_p, inv_p, xs_p, xd_p, w_cat, b_cat)

    return out[:n_dst, :dout]


def xavier_uniform(key, fan_in, fan_out, gain):
    # torch.nn.init.xavier_uniform_ on a (fan_out, fan_in) Linear weight,
    # returned pre-transposed as (fan_in, fan_out) (uniform is symmetric).
    bound = gain * math.sqrt(6.0 / (fan_in + fan_out))
    return jax.random.uniform(key, (fan_in, fan_out), jnp.float32, -bound, bound)


if __name__ == "__main__":
    key = jax.random.PRNGKey(0)
    hp = jax.lax.Precision.HIGHEST

    def reference_f32(adj_i8, inv_deg, x, w_self_t, w_neigh_t, b_self, bias):
        # Exact f32 module semantics (feat_drop p=0 -> identity; norm=None).
        a_norm = adj_i8.astype(jnp.float32) * inv_deg[:, None]
        neigh = jnp.dot(a_norm, x, precision=hp)
        return jnp.maximum(jnp.dot(x, w_self_t, precision=hp) + b_self
                           + jnp.dot(neigh, w_neigh_t, precision=hp) + bias, 0.0)

    def reference_bf16(adj_i8, inv_deg, x, w_self_t, w_neigh_t, b_self, bias):
        # Matches the kernel numerics: exact 0/1 A, bf16 X, f32 accumulation,
        # exact f32 inverse degree, bf16 fused linear with f32 accumulation.
        xbf = x.astype(jnp.bfloat16).astype(jnp.float32)
        neigh = jnp.dot(adj_i8.astype(jnp.float32), xbf, precision=hp) * inv_deg[:, None]
        cat = jnp.concatenate([xbf, neigh], axis=1).astype(jnp.bfloat16).astype(jnp.float32)
        wcat = jnp.concatenate([w_self_t, w_neigh_t], axis=0
                               ).astype(jnp.bfloat16).astype(jnp.float32)
        return jnp.maximum(jnp.dot(cat, wcat, precision=hp) + (b_self + bias), 0.0)

    cases = [
        # small module-sized case: grid (1,1), padded boundary tile
        dict(N=16, din=32, dout=64, tm=1024, tk=2048),
        # multi-tile case: grid (3,3), exercises k-accumulation, multi-row
        # output residency and padded boundary tiles (300 -> 384)
        dict(N=300, din=32, dout=64, tm=128, tk=128),
    ]

    for c in cases:
        key, k_x, k_adj, k_wn, k_ws, k_bs = jax.random.split(key, 6)
        N, DIN, DOUT = c["N"], c["din"], c["dout"]  # in_feats<=out_feats -> lin_before_mp=False

        # Node features (feat_drop has p=0.0 -> identity).
        x = jax.random.normal(k_x, (N, DIN), jnp.float32)

        # Deterministic random directed graph, stored directly in the kernel's
        # 1-byte adjacency dtype; inverse degrees computed once ("cached upstream").
        adj = (jax.random.uniform(k_adj, (N, N)) < 0.35).astype(jnp.int8)
        deg = adj.astype(jnp.float32).sum(axis=1)
        inv_deg = jnp.where(deg > 0, 1.0 / jnp.maximum(deg, 1.0), 0.0)

        # Parameters (deterministic, matching __init__ / reset_parameters).
        gain = math.sqrt(2.0)  # nn.init.calculate_gain('relu')
        w_neigh_t = xavier_uniform(k_wn, DIN, DOUT, gain)   # fc_neigh.weight^T
        w_self_t = xavier_uniform(k_ws, DIN, DOUT, gain)    # fc_self.weight^T
        b_bound = 1.0 / math.sqrt(DIN)                      # default Linear bias init
        b_self = jax.random.uniform(k_bs, (DOUT,), jnp.float32, -b_bound, b_bound)
        bias = jnp.zeros((DOUT,), jnp.float32)              # self.bias parameter

        out = sage_conv_mean(adj, x, w_neigh_t, w_self_t, b_self, bias,
                             inv_deg=inv_deg, tm=c["tm"], tk=c["tk"])
        out = jax.block_until_ready(out)
        assert out.shape == (N, DOUT)

        ref_m = reference_bf16(adj, inv_deg, x, w_self_t, w_neigh_t, b_self, bias)
        assert jnp.allclose(out, ref_m, atol=2e-3, rtol=2e-3), \
            f"mismatch vs matched-precision reference for case {c}"

        ref_f = reference_f32(adj, inv_deg, x, w_self_t, w_neigh_t, b_self, bias)
        assert jnp.allclose(out, ref_f, atol=1e-1, rtol=1e-1), \
            f"mismatch vs exact f32 reference for case {c}"

    print("KERNEL_OK")
</pallas_src>

<mosaic_0001>
module attributes {stable_mosaic.version = 11 : i64} {
  func.func @sage_mean_kernel(%arg0: i32, %arg1: i32, %arg2: memref<128x128xi8, #tpu.memory_space<vmem>>, %arg3: memref<128x1xf32, #tpu.memory_space<vmem>>, %arg4: memref<128x128xbf16, #tpu.memory_space<vmem>>, %arg5: memref<128x128xbf16, #tpu.memory_space<vmem>>, %arg6: memref<256x128xbf16, #tpu.memory_space<vmem>>, %arg7: memref<1x128xf32, #tpu.memory_space<vmem>>, %arg8: memref<128x128xf32, #tpu.memory_space<vmem>>, %arg9: memref<128x256xf32, #tpu.memory_space<vmem>>) attributes {dimension_semantics = [#tpu.dimension_semantics<parallel>, #tpu.dimension_semantics<arbitrary>], iteration_bounds = array<i64: 1, 1>, scalar_prefetch = 0 : i64, scratch_operands = 1 : i64, tpu.core_type = #tpu.core_type<tc>, window_params = [{transform_indices = @transform_0, window_bounds = array<i64: 128, 128>}, {transform_indices = @transform_1, window_bounds = array<i64: 128, 1>}, {transform_indices = @transform_2, window_bounds = array<i64: 128, 128>}, {transform_indices = @transform_3, window_bounds = array<i64: 128, 128>}, {pipeline_mode = #tpu.pipeline_mode<synchronous>, transform_indices = @transform_4, window_bounds = array<i64: 256, 128>}, {pipeline_mode = #tpu.pipeline_mode<synchronous>, transform_indices = @transform_5, window_bounds = array<i64: 1, 128>}, {transform_indices = @transform_6, window_bounds = array<i64: 128, 128>}]} {
    %c0_i32 = arith.constant 0 : i32
    %0 = arith.cmpi eq, %arg1, %c0_i32 : i32
    %1 = arith.extui %0 : i1 to i32
    %c0_i32_0 = arith.constant 0 : i32
    %2 = arith.cmpi ne, %1, %c0_i32_0 : i32
    scf.if %2 {
      %c0_9 = arith.constant 0 : index
      %c0_10 = arith.constant 0 : index
      %13 = vector.load %arg5[%c0_9, %c0_10] : memref<128x128xbf16, #tpu.memory_space<vmem>>, vector<128x128xbf16>
      %14 = arith.extf %13 : vector<128x128xbf16> to vector<128x128xf32>
      %c0_11 = arith.constant 0 : index
      %c0_12 = arith.constant 0 : index
      %15 = vector.load %arg9[%c0_11, %c0_12] : memref<128x256xf32, #tpu.memory_space<vmem>>, vector<128x128xf32>
      tpu.vector_store %arg9[%c0_11, %c0_12], %14 {strides = array<i32>} : memref<128x256xf32, #tpu.memory_space<vmem>>, vector<128x128xf32>,
      %cst_13 = arith.constant 0.000000e+00 : f32
      %16 = vector.broadcast %cst_13 : f32 to vector<128x128xf32>
      %c0_14 = arith.constant 0 : index
      %c128_15 = arith.constant 128 : index
      %17 = vector.load %arg9[%c0_14, %c128_15] : memref<128x256xf32, #tpu.memory_space<vmem>>, vector<128x128xf32>
      tpu.vector_store %arg9[%c0_14, %c128_15], %16 {strides = array<i32>} : memref<128x256xf32, #tpu.memory_space<vmem>>, vector<128x128xf32>,
    } else {
    }
    %c0 = arith.constant 0 : index
    %c128 = arith.constant 128 : index
    %3 = vector.load %arg9[%c0, %c128] : memref<128x256xf32, #tpu.memory_space<vmem>>, vector<128x128xf32>
    %c0_1 = arith.constant 0 : index
    %c0_2 = arith.constant 0 : index
    %4 = vector.load %arg2[%c0_1, %c0_2] : memref<128x128xi8, #tpu.memory_space<vmem>>, vector<128x128xi8>
    %5 = arith.sitofp %4 : vector<128x128xi8> to vector<128x128xbf16>
    %c0_3 = arith.constant 0 : index
    %c0_4 = arith.constant 0 : index
    %6 = vector.load %arg4[%c0_3, %c0_4] : memref<128x128xbf16, #tpu.memory_space<vmem>>, vector<128x128xbf16>
    %cst = arith.constant dense<0.000000e+00> : vector<128x128xf32>
    %7 = tpu.matmul %5, %6, %cst {dimension_numbers = #tpu.dot_dimension_numbers<[1], [0], [0], [1], [0, 0, 1, 1], [], []>} : vector<128x128xbf16>, vector<128x128xbf16>, vector<128x128xf32> -> vector<128x128xf32>
    %8 = arith.addf %3, %7 : vector<128x128xf32>
    %c0_5 = arith.constant 0 : index
    %c128_6 = arith.constant 128 : index
    %9 = vector.load %arg9[%c0_5, %c128_6] : memref<128x256xf32, #tpu.memory_space<vmem>>, vector<128x128xf32>
    tpu.vector_store %arg9[%c0_5, %c128_6], %8 {strides = array<i32>} : memref<128x256xf32, #tpu.memory_space<vmem>>, vector<128x128xf32>,
    %c0_i32_7 = arith.constant 0 : i32
    %10 = arith.cmpi eq, %arg1, %c0_i32_7 : i32
    %11 = arith.extui %10 : i1 to i32
    %c0_i32_8 = arith.constant 0 : i32
    %12 = arith.cmpi ne, %11, %c0_i32_8 : i32
    scf.if %12 {
      %c0_9 = arith.constant 0 : index
      %c128_10 = arith.constant 128 : index
      %13 = vector.load %arg9[%c0_9, %c128_10] : memref<128x256xf32, #tpu.memory_space<vmem>>, vector<128x128xf32>
      %c0_11 = arith.constant 0 : index
      %c0_12 = arith.constant 0 : index
      %14 = vector.load %arg3[%c0_11, %c0_12] : memref<128x1xf32, #tpu.memory_space<vmem>>, vector<128x1xf32>
      %15 = vector.broadcast %14 : vector<128x1xf32> to vector<128x128xf32>
      %16 = arith.mulf %13, %15 : vector<128x128xf32>
      %c0_13 = arith.constant 0 : index
      %c128_14 = arith.constant 128 : index
      %17 = vector.load %arg9[%c0_13, %c128_14] : memref<128x256xf32, #tpu.memory_space<vmem>>, vector<128x128xf32>
      tpu.vector_store %arg9[%c0_13, %c128_14], %16 {strides = array<i32>} : memref<128x256xf32, #tpu.memory_space<vmem>>, vector<128x128xf32>,
      %c0_15 = arith.constant 0 : index
      %c0_16 = arith.constant 0 : index
      %18 = vector.load %arg9[%c0_15, %c0_16] : memref<128x256xf32, #tpu.memory_space<vmem>>, vector<128x256xf32>
      %19 = arith.truncf %18 : vector<128x256xf32> to vector<128x256xbf16>
      %c0_17 = arith.constant 0 : index
      %c0_18 = arith.constant 0 : index
      %20 = vector.load %arg6[%c0_17, %c0_18] : memref<256x128xbf16, #tpu.memory_space<vmem>>, vector<256x128xbf16>
      %cst_19 = arith.constant dense<0.000000e+00> : vector<128x128xf32>
      %21 = tpu.matmul %19, %20, %cst_19 {dimension_numbers = #tpu.dot_dimension_numbers<[1], [0], [0], [1], [0, 0, 1, 1], [], []>} : vector<128x256xbf16>, vector<256x128xbf16>, vector<128x128xf32> -> vector<128x128xf32>
      %c0_20 = arith.constant 0 : index
      %c0_21 = arith.constant 0 : index
      %22 = vector.load %arg7[%c0_20, %c0_21] : memref<1x128xf32, #tpu.memory_space<vmem>>, vector<1x128xf32>
      %23 = vector.broadcast %22 : vector<1x128xf32> to vector<128x128xf32>
      %24 = arith.addf %21, %23 : vector<128x128xf32>
      %cst_22 = arith.constant 0.000000e+00 : f32
      %25 = vector.broadcast %cst_22 : f32 to vector<128x128xf32>
      %26 = arith.maximumf %24, %25 : vector<128x128xf32>
      %c0_23 = arith.constant 0 : index
      %c0_24 = arith.constant 0 : index
      %27 = vector.load %arg8[%c0_23, %c0_24] : memref<128x128xf32, #tpu.memory_space<vmem>>, vector<128x128xf32>
      tpu.vector_store %arg8[%c0_23, %c0_24], %26 {strides = array<i32>} : memref<128x128xf32, #tpu.memory_space<vmem>>, vector<128x128xf32>,
    } else {
    }
    return
  }
  func.func @transform_0(%arg0: i32, %arg1: i32) -> (i32, i32) {
    %c0_i32 = arith.constant 0 : i32
    return %arg0, %arg1 : i32, i32
  }
  func.func @transform_1(%arg0: i32, %arg1: i32) -> (i32, i32) {
    %c0_i32 = arith.constant 0 : i32
    %c0_i32_0 = arith.constant 0 : i32
    return %arg0, %c0_i32 : i32, i32
  }
  func.func @transform_2(%arg0: i32, %arg1: i32) -> (i32, i32) {
    %c0_i32 = arith.constant 0 : i32
    %c0_i32_0 = arith.constant 0 : i32
    return %arg1, %c0_i32 : i32, i32
  }
  func.func @transform_3(%arg0: i32, %arg1: i32) -> (i32, i32) {
    %c0_i32 = arith.constant 0 : i32
    %c0_i32_0 = arith.constant 0 : i32
    return %arg0, %c0_i32 : i32, i32
  }
  func.func @transform_4(%arg0: i32, %arg1: i32) -> (i32, i32) {
    %c0_i32 = arith.constant 0 : i32
    %c0_i32_0 = arith.constant 0 : i32
    %c0_i32_1 = arith.constant 0 : i32
    return %c0_i32, %c0_i32_0 : i32, i32
  }
  func.func @transform_5(%arg0: i32, %arg1: i32) -> (i32, i32) {
    %c0_i32 = arith.constant 0 : i32
    %c0_i32_0 = arith.constant 0 : i32
    %c0_i32_1 = arith.constant 0 : i32
    return %c0_i32, %c0_i32_0 : i32, i32
  }
  func.func @transform_6(%arg0: i32, %arg1: i32) -> (i32, i32) {
    %c0_i32 = arith.constant 0 : i32
    %c0_i32_0 = arith.constant 0 : i32
    return %arg0, %c0_i32 : i32, i32
  }
}

</mosaic_0001>

<bundles_post_ra>
// kernel: tpu_custom_call.1
= control target key start
LH: loop header
LB: loop body
LE: loop exit
PB: predicated region body
PF: predicated region fallthrough
CT: control target
= control target key end

     0   :  { %11 = vsyncpa [#allocation4], 0  ;;  %s1328_s0 = inlined_call_operand.hbm [shape: s8[128,128], index: 0, kind: input, shape index: {}]   ;;  %s1329_s1 = inlined_call_operand.vmem [shape: f32[128,1], index: 1, kind: input, shape index: {}]   ;;  %s1330_s2 = inlined_call_operand.hbm [shape: bf16[128,128], index: 2, kind: input, shape index: {}]   ;;  %s1331_s3 = inlined_call_operand.hbm [shape: bf16[128,128], index: 3, kind: input, shape index: {}]   ;;  %s1332_s4 = inlined_call_operand.vmem [shape: bf16[256,128], index: 4, kind: input, shape index: {}]   ;;  %s1333_s5 = inlined_call_operand.vmem [shape: f32[1,128], index: 5, kind: input, shape index: {}]   ;;  %s1334_s6 = inlined_call_operand.hbm [shape: f32[128,128], index: 6, kind: output, shape index: {}]  }
   0x1   :  { %12 = vsyncpa [#allocation7], 0 }
   0x2   :  { %13 = vsyncpa [#allocation5], 0  ;;  %s1145_s21 = smov [#allocation6]  }
   0x3   :  { %s33_s22 = sshll.u32 %s1145_s21, 4  ;;  %s34_s22 = int_to_ptr.vmem [resolvable:$true] %s33_s22 }
   0x4   :  { %s1067_s23 = scalar_lea.vmem %s34_s22, 1024  ;;  %p1072_p1 = scmp.lt.s32.totalorder %s34_s22, %s34_s22 }
   0x5   :  { %p1068_p0 = scmp.ne.s32.totalorder %s34_s22, %s1067_s23  ;;  %p1073_p2 = scmp.lt.s32.totalorder %s1067_s23, %s1067_s23 }
   0x7   :  { %p1074_p3 = por %p1073_p2, %p1072_p1 }
   0x9   :  { %p1075_p4 = pnand %p1074_p3, %p1068_p0 }
   0xb   :  { %1078 = shalt.err (!%p1075_p4)
}
   0xc   :  { %s1146_s24 = smov 64   ;;  %s1147_s25 = smov 4  }
   0xd   :  { %39 = dma.hbm_to_vmem [thread:$0]  %s1330_s2, 1024, %s34_s22, [#allocation7], %s1146_s24, %s1146_s24, %s1147_s25  }
   0xe   :  { %s1148_s28 = smov [#allocation3]  }
   0xf   :  { %s19_s29 = sshll.u32 %s1148_s28, 4  ;;  %s20_s29 = int_to_ptr.vmem [resolvable:$true] %s19_s29 }
  0x10   :  { %s1087_s30 = scalar_lea.vmem %s20_s29, 512  ;;  %p1092_p6 = scmp.lt.s32.totalorder %s20_s29, %s20_s29 }
  0x11   :  { %p1088_p5 = scmp.ne.s32.totalorder %s20_s29, %s1087_s30  ;;  %p1093_p7 = scmp.lt.s32.totalorder %s1087_s30, %s1087_s30 }
  0x13   :  { %p1094_p8 = por %p1093_p7, %p1092_p6 }
  0x15   :  { %p1095_p9 = pnand %p1094_p8, %p1088_p5 }
  0x17   :  { %1098 = shalt.err (!%p1095_p9)
}
  0x18   :  { %s1149_s7 = smov 128   ;;  %s1150_s8 = smov 8  }
  0x19   :  { %25 = dma.hbm_to_vmem [thread:$0]  %s1328_s0, 512, %s20_s29, [#allocation4], %s1149_s7, %s1149_s7, %s1150_s8  }
  0x1a   :  { %s1151_s2 = smov [#allocation8]  }
  0x1b   :  { %s45_s11 = sshll.u32 %s1151_s2, 4  ;;  %s46_s11 = int_to_ptr.vmem [resolvable:$true] %s45_s11 }
  0x1c   :  { %s1107_s12 = scalar_lea.vmem %s46_s11, 1024  ;;  %p1112_p11 = scmp.lt.s32.totalorder %s46_s11, %s46_s11 }
  0x1d   :  { %p1108_p10 = scmp.ne.s32.totalorder %s46_s11, %s1107_s12  ;;  %p1113_p12 = scmp.lt.s32.totalorder %s1107_s12, %s1107_s12 }
  0x1f   :  { %p1114_p13 = por %p1113_p12, %p1112_p11 }
  0x21   :  { %p1115_p0 = pnand %p1114_p13, %p1108_p10 }
  0x23   :  { %1118 = shalt.err (!%p1115_p0)
}
  0x24   :  { %51 = dma.hbm_to_vmem [thread:$0]  %s1331_s3, 1024, %s46_s11, [#allocation7], %s1146_s24, %s1146_s24, %s1147_s25  }
  0x25   :  { %1139 = dma.done.wait [#allocation4], 512  }
  0x26   :  { %1140 = vsyncadd [#allocation4], 4294966784 }
  0x27   :  { %1141 = dma.done.wait [#allocation7], 2048  }
  0x28   :  { %1142 = vsyncadd [#allocation7], 4294965248  ;;  %v1152_v0 = vmov 0   ;;  %v1035_v1 = vld [vmem:[#allocation6 + $0x38] sm:$0xff]   ;;  %v1036_v2 = vld [vmem:[#allocation6 + $0x30] sm:$0xff]  }
  0x29   :  { %1033 = vset.pattern.permute.xlu0 %v1152_v0  ;;  %1034 = vset.pattern.permute.xlu1 %v1152_v0  ;;  %v1037_v3 = vld [vmem:[#allocation6 + $0x28] sm:$0xff]   ;;  %v1038_v4 = vld [vmem:[#allocation6 + $0x20] sm:$0xff]   ;;  %v380_v8 = vld [vmem:[%s1329_s1 + $0x30] sm:$0xff] }
  0x2a   :  { %976 = vmatprep.subr.bf16.mxu0 %v1035_v1  ;;  %v1201_v5 = vld [vmem:[#allocation3] sm:$0xff]  ;;  %422 = vperm.xlu1 %1034, %v380_v8   ;;  %v379_v9 = vld [vmem:[%s1329_s1 + $0x28] sm:$0xff]  ;;  %v381_v10 = vld [vmem:[%s1329_s1 + $0x38] sm:$0xff] }
  0x2b   :  { %977 = vmatpush3.bf16.msra.mxu0 %v1035_v1  ;;  %v154_v6 = vunpack.c.l.s8.bf16 %v1201_v5  ;;  %v378_v7 = vld [vmem:[%s1329_s1 + $0x20] sm:$0xff]  ;;  %v1039_v11 = vld [vmem:[#allocation6 + $0x18] sm:$0xff]   ;;  %v383_v13 = vld [vmem:[%s1329_s1 + $0x48] sm:$0xff]  ;;  %v155_v32 = vunpack.c.h.s8.bf16 %v1201_v5 }
  0x2c   :  { %978 = vmatprep.subr.bf16.mxu0 %v1036_v2  ;;  %412 = vperm.xlu0 %1033, %v378_v7   ;;  %v382_v12 = vld [vmem:[%s1329_s1 + $0x40] sm:$0xff]  ;;  %v1043_v14 = vld [vmem:[%s1332_s4 + $0x78] sm:$0xff]   ;;  %v1040_v15 = vld [vmem:[#allocation6 + $0x10] sm:$0xff]  }
  0x2d   :  { %992 = vmatprep.mubr.bf16.mxu0 %v154_v6  ;;  %v384_v16 = vld [vmem:[%s1329_s1 + $0x50] sm:$0xff]  ;;  %v1044_v17 = vld [vmem:[%s1332_s4 + $0x38] sm:$0xff]   ;;  %1008 = vmatprep.subr.bf16.mxu1 %v1043_v14  ;;  %v1041_v20 = vld [vmem:[#allocation6 + $0x8] sm:$0xff]  }
  0x2e   :  { %427 = vperm.xlu1 %1034, %v381_v10   ;;  %v1045_v18 = vld [vmem:[%s1332_s4 + $0x70] sm:$0xff]   ;;  %v385_v19 = vld [vmem:[%s1329_s1 + $0x58] sm:$0xff]  ;;  %1016 = vmatpush3.bf16.msra.mxu1 %v1044_v17  ;;  %v374_v21 = vld [vmem:[%s1329_s1] sm:$0xff] }
  0x2f   :  { %979 = vmatpush3.bf16.msra.mxu0 %v1036_v2  ;;  %1009 = vmatprep.subr.bf16.mxu1 %v1045_v18  ;;  %v375_v22 = vld [vmem:[%s1329_s1 + $0x8] sm:$0xff]  ;;  %v1046_v23 = vld [vmem:[%s1332_s4 + $0x30] sm:$0xff]   ;;  %v1042_v24 = vld [vmem:[#allocation6] sm:$0xff]  }
  0x30   :  { %980 = vmatprep.subr.bf16.mxu0 %v1037_v3  ;;  %417 = vperm.xlu0 %1033, %v379_v9   ;;  %v1047_v25 = vld [vmem:[%s1332_s4 + $0x68] sm:$0xff]   ;;  %v386_v26 = vld [vmem:[%s1329_s1 + $0x60] sm:$0xff]  ;;  %v1051_v33 = vld [vmem:[%s1332_s4 + $0x58] sm:$0xff]  }
  0x31   :  { %v387_v27 = vld [vmem:[%s1329_s1 + $0x68] sm:$0xff]  ;;  %v1049_v29 = vld [vmem:[%s1332_s4 + $0x60] sm:$0xff]   ;;  %v376_v35 = vld [vmem:[%s1329_s1 + $0x10] sm:$0xff] }
  0x32   :  { %437 = vperm.xlu1 %1034, %v383_v13   ;;  %1017 = vmatpush3.bf16.msra.mxu1 %v1046_v23  ;;  %v1048_v28 = vld [vmem:[%s1332_s4 + $0x28] sm:$0xff]   ;;  %v1050_v31 = vld [vmem:[%s1332_s4 + $0x20] sm:$0xff]   ;;  %v377_v36 = vld [vmem:[%s1329_s1 + $0x18] sm:$0xff] }
  0x33   :  { %981 = vmatpush3.bf16.msra.mxu0 %v1037_v3  ;;  %1010 = vmatprep.subr.bf16.mxu1 %v1047_v25  ;;  %v151_v30 = vld [vmem:[#allocation3 + $0x8] sm:$0xff]  ;;  %v1052_v37 = vld [vmem:[%s1332_s4 + $0x18] sm:$0xff]   ;;  %v388_v38 = vld [vmem:[%s1329_s1 + $0x70] sm:$0xff] }
  0x34   :  { %982 = vmatprep.subr.bf16.mxu0 %v1038_v4  ;;  %432 = vperm.xlu0 %1033, %v382_v12   ;;  %v156_v34 = vunpack.c.l.s8.bf16 %v151_v30  ;;  %v152_v39 = vld [vmem:[#allocation3 + $0x10] sm:$0xff]  ;;  %v389_v40 = vld [vmem:[%s1329_s1 + $0x78] sm:$0xff]  ;;  %v157_v41 = vunpack.c.h.s8.bf16 %v151_v30  ;;  %v1055_v49 = vld [vmem:[%s1332_s4 + $0x48] sm:$0xff]  }
  0x35   :  { %v158_v42 = vunpack.c.l.s8.bf16 %v152_v39  ;;  %v153_v43 = vld [vmem:[#allocation3 + $0x18] sm:$0xff]  ;;  %v159_v44 = vunpack.c.h.s8.bf16 %v152_v39  ;;  %v1053_v47 = vld [vmem:[%s1332_s4 + $0x50] sm:$0xff]   ;;  %v1056_v50 = vld [vmem:[%s1332_s4 + $0x8] sm:$0xff]  }
  0x36   :  { %447 = vperm.xlu1 %1034, %v385_v19   ;;  %1018 = vmatpush3.bf16.msra.mxu1 %v1048_v28  ;;  %v160_v45 = vunpack.c.l.s8.bf16 %v153_v43  ;;  %v161_v46 = vunpack.c.h.s8.bf16 %v153_v43  ;;  %v1054_v48 = vld [vmem:[%s1332_s4 + $0x10] sm:$0xff]   ;;  %v1057_v51 = vld [vmem:[%s1332_s4 + $0x40] sm:$0xff]  }
  0x37   :  { %983 = vmatpush3.bf16.msra.mxu0 %v1038_v4  ;;  %1011 = vmatprep.subr.bf16.mxu1 %v1049_v29  ;;  %v1058_v52 = vld [vmem:[%s1332_s4] sm:$0xff]  }
  0x38   :  { %984 = vmatprep.subr.bf16.mxu0 %v1039_v11  ;;  %442 = vperm.xlu0 %1033, %v384_v16   ;;  %v858_v13 = vld [vmem:[#allocation8] sm:$0xff]  }
  0x39   :  { %v892_v39 = vld [vmem:[#allocation8 + $0x20] sm:$0xff]  }
  0x3a   :  { %397 = vperm.xlu1 %1034, %v375_v22   ;;  %1019 = vmatpush3.bf16.msra.mxu1 %v1050_v31 }
  0x3b   :  { %985 = vmatpush3.bf16.msra.mxu0 %v1039_v11  ;;  %1012 = vmatprep.subr.bf16.mxu1 %v1051_v33 }
  0x3c   :  { %986 = vmatprep.subr.bf16.mxu0 %v1040_v15  ;;  %392 = vperm.xlu0 %1033, %v374_v21  }
  0x3e   :  { %457 = vperm.xlu1 %1034, %v387_v27   ;;  %1020 = vmatpush3.bf16.msra.mxu1 %v1052_v37 }
  0x3f   :  { %987 = vmatpush3.bf16.msra.mxu0 %v1040_v15  ;;  %1013 = vmatprep.subr.bf16.mxu1 %v1053_v47 }
  0x40   :  { %988 = vmatprep.subr.bf16.mxu0 %v1041_v20  ;;  %452 = vperm.xlu0 %1033, %v386_v26  }
  0x42   :  { %407 = vperm.xlu1 %1034, %v377_v36   ;;  %1021 = vmatpush3.bf16.msra.mxu1 %v1054_v48 }
  0x43   :  { %989 = vmatpush3.bf16.msra.mxu0 %v1041_v20  ;;  %1014 = vmatprep.subr.bf16.mxu1 %v1055_v49 }
  0x44   :  { %990 = vmatprep.subr.bf16.mxu0 %v1042_v24  ;;  %402 = vperm.xlu0 %1033, %v376_v35  }
  0x46   :  { %467 = vperm.xlu1 %1034, %v389_v40   ;;  %1022 = vmatpush3.bf16.msra.mxu1 %v1056_v50 }
  0x47   :  { %991 = vmatpush3.bf16.msra.mxu0 %v1042_v24  ;;  %1015 = vmatprep.subr.bf16.mxu1 %v1057_v51  ;;  %v890_v24 = vld [vmem:[#allocation8 + $0x10] sm:$0xff]  }
  0x48   :  { %912 = vmatprep.subr.bf16.mxu0 %v1043_v14  ;;  %462 = vperm.xlu0 %1033, %v388_v38  }
  0x4a   :  { %993 = vmatmul.mubr.bf16.vlgmr.msra.gmra.mxu0 %v155_v32  ;;  %1023 = vmatpush3.bf16.msra.mxu1 %v1058_v52 }
  0x4b   :  { %996 = vmatprep.mubr.bf16.mxu0 %v156_v34  ;;  %913 = vmatpush3.bf16.msra.mxu0 %v1044_v17 }
  0x4c   :  { %914 = vmatprep.subr.bf16.mxu0 %v1045_v18 }
  0x4f   :  { %915 = vmatpush3.bf16.msra.mxu0 %v1046_v23 }
  0x50   :  { %916 = vmatprep.subr.bf16.mxu0 %v1047_v25  ;;  %v889_v25 = vld [vmem:[#allocation8 + $0x8] sm:$0xff]  }
  0x52   :  { %997 = vmatmul.mubr.bf16.gmra.mxu0 %v157_v41 }
  0x53   :  { %1000 = vmatprep.mubr.bf16.mxu0 %v158_v42  ;;  %917 = vmatpush3.bf16.msra.mxu0 %v1048_v28 }
  0x54   :  { %918 = vmatprep.subr.bf16.mxu0 %v1049_v29 }
  0x57   :  { %919 = vmatpush3.bf16.msra.mxu0 %v1050_v31 }
  0x58   :  { %920 = vmatprep.subr.bf16.mxu0 %v1051_v33  ;;  %v891_v33 = vld [vmem:[#allocation8 + $0x18] sm:$0xff]  }
  0x5a   :  { %1001 = vmatmul.mubr.bf16.gmra.mxu0 %v159_v44  ;;  %v893_v44 = vld [vmem:[#allocation8 + $0x28] sm:$0xff]  }
  0x5b   :  { %1004 = vmatprep.mubr.bf16.mxu0 %v160_v45  ;;  %921 = vmatpush3.bf16.msra.mxu0 %v1052_v37 }
  0x5c   :  { %922 = vmatprep.subr.bf16.mxu0 %v1053_v47 }
  0x5f   :  { %923 = vmatpush3.bf16.msra.mxu0 %v1054_v48 }
  0x60   :  { %924 = vmatprep.subr.bf16.mxu0 %v1055_v49 }
  0x62   :  { %1005 = vmatmul.mubr.bf16.gmra.mxu0 %v161_v46 }
  0x63   :  { %925 = vmatpush3.bf16.msra.mxu0 %v1056_v50  ;;  %v894_v50 = vld [vmem:[#allocation8 + $0x30] sm:$0xff]  }
  0x64   :  { %926 = vmatprep.subr.bf16.mxu0 %v1057_v51 }
  0x67   :  { %927 = vmatpush3.bf16.msra.mxu0 %v1058_v52  ;;  %v895_v52 = vld [vmem:[#allocation8 + $0x38] sm:$0xff]  }
  0xa5   :  { %v423_v53 = vpop.permute.xlu1 %422 }
  0xa7   :  { %v413_v54 = vpop.permute.xlu0 %412 }
  0xa9   :  { %v428_v55 = vpop.permute.xlu1 %427 }
  0xab   :  { %v418_v56 = vpop.permute.xlu0 %417 }
  0xad   :  { %v438_v57 = vpop.permute.xlu1 %437 }
  0xaf   :  { %v433_v58 = vpop.permute.xlu0 %432 }
  0xb1   :  { %v448_v59 = vpop.permute.xlu1 %447 }
  0xb3   :  { %v443_v60 = vpop.permute.xlu0 %442 }
  0xb5   :  { %v398_v61 = vpop.permute.xlu1 %397 }
  0xb7   :  { %v393_v62 = vpop.permute.xlu0 %392 }
  0xb9   :  { %v458_v63 = vpop.permute.xlu1 %457 }
  0xbb   :  { %v453_v0 = vpop.permute.xlu0 %452 }
  0xbd   :  { %v408_v3 = vpop.permute.xlu1 %407 }
  0xbf   :  { %v403_v5 = vpop.permute.xlu0 %402 }
  0xc1   :  { %v468_v46 = vpop.permute.xlu1 %467 }
  0xc3   :  { %v463_v48 = vpop.permute.xlu0 %462 }
 0x10a   :  { %v994_v1 = vpop.f32.mrf.mxu0 }
 0x10b   :  { %v472_v11 = vmul.f32 %v994_v1, %v403_v5 }
 0x10c   :  { %v260_v2 = vpop.f32.mrf.mxu0 }
 0x10d   :  { %v470_v7 = vmul.f32 %v393_v62, %v260_v2 }
 0x10e   :  { %v995_v4 = vpop.f32.mrf.mxu0 }
 0x10f   :  { %v473_v8 = vmul.f32 %v995_v4, %v408_v3 }
 0x110   :  { %v263_v6 = vpop.f32.mrf.mxu0 }
 0x111   :  { %v471_v9 = vmul.f32 %v398_v61, %v263_v6  ;;  %v537_v15 = vpack.c.bf16 %v473_v8, %v472_v11 }
 0x112   :  { %v998_v10 = vpop.f32.mrf.mxu0 }
 0x113   :  { %v535_v12 = vpack.c.bf16 %v471_v9, %v470_v7  ;;  %v476_v22 = vmul.f32 %v998_v10, %v423_v53 }
 0x114   :  { %v276_v14 = vpop.f32.mrf.mxu0 }
 0x115   :  { %717 = vmatprep.mubr.bf16.mxu0 %v535_v12  ;;  %v474_v18 = vmul.f32 %v413_v54, %v276_v14 }
 0x116   :  { %v999_v16 = vpop.f32.mrf.mxu0  ;;  %718 = vmatmul.mubr.bf16.vlgmr.msra.gmra.mxu0 %v858_v13 }
 0x117   :  { %725 = vmatprep.mubr.bf16.mxu0 %v537_v15  ;;  %v477_v19 = vmul.f32 %v999_v16, %v428_v55 }
 0x118   :  { %v279_v17 = vpop.f32.mrf.mxu0 }
 0x119   :  { %v475_v20 = vmul.f32 %v418_v56, %v279_v17  ;;  %v541_v27 = vpack.c.bf16 %v477_v19, %v476_v22  ;;  %v1304_v56 = vld [vmem:[%s1333_s5] ss:$0 sm:$0xff]  ;;  %s1153_s5 = smov [#allocation9]  }
 0x11a   :  { %v1002_v21 = vpop.f32.mrf.mxu0  ;;  %s819_s27 = sshll.u32 %s1153_s5, 4  ;;  %s820_s27 = int_to_ptr.vmem [resolvable:$true] %s819_s27 }
 0x11b   :  { %v539_v23 = vpack.c.bf16 %v475_v20, %v474_v18  ;;  %v480_v38 = vmul.f32 %v1002_v21, %v443_v60  ;;  %s1119_s28 = scalar_lea.vmem %s820_s27, 2048  ;;  %p1124_p2 = scmp.lt.s32.totalorder %s820_s27, %s820_s27 }
 0x11c   :  { %v292_v26 = vpop.f32.mrf.mxu0  ;;  %p1120_p1 = scmp.ne.s32.totalorder %s820_s27, %s1119_s28  ;;  %p1125_p3 = scmp.lt.s32.totalorder %s1119_s28, %s1119_s28 }
 0x11d   :  { %733 = vmatprep.mubr.bf16.mxu1 %v539_v23  ;;  %v478_v32 = vmul.f32 %v433_v58, %v292_v26 }
 0x11e   :  { %v1003_v28 = vpop.f32.mrf.mxu0  ;;  %734 = vmatmul.mubr.bf16.vlgmr.msra.gmra.mxu1 %v890_v24  ;;  %726 = vmatmul.mubr.bf16.gmra.mxu0 %v889_v25  ;;  %p1126_p4 = por %p1125_p3, %p1124_p2 }
 0x11f   :  { %741 = vmatprep.mubr.bf16.mxu1 %v541_v27  ;;  %v481_v36 = vmul.f32 %v1003_v28, %v448_v59 }
 0x120   :  { %v295_v29 = vpop.f32.mrf.mxu0  ;;  %p1127_p5 = pnand %p1126_p4, %p1120_p1 }
 0x121   :  { %v479_v30 = vmul.f32 %v438_v57, %v295_v29  ;;  %v545_v40 = vpack.c.bf16 %v481_v36, %v480_v38 }
 0x122   :  { %v1006_v31 = vpop.f32.mrf.mxu0 }
 0x123   :  { %v543_v34 = vpack.c.bf16 %v479_v30, %v478_v32  ;;  %v484_v49 = vmul.f32 %v1006_v31, %v463_v48 }
 0x124   :  { %v308_v35 = vpop.f32.mrf.mxu0 }
 0x125   :  { %v482_v43 = vmul.f32 %v453_v0, %v308_v35 }
 0x126   :  { %742 = vmatmul.mubr.bf16.gmra.mxu1 %v891_v33  ;;  %v1007_v37 = vpop.f32.mrf.mxu0 }
 0x127   :  { %749 = vmatprep.mubr.bf16.mxu1 %v543_v34  ;;  %v485_v47 = vmul.f32 %v1007_v37, %v468_v46 }
 0x128   :  { %v311_v41 = vpop.f32.mrf.mxu0 }
 0x129   :  { %v483_v42 = vmul.f32 %v458_v63, %v311_v41  ;;  %v549_v51 = vpack.c.bf16 %v485_v47, %v484_v49 }
 0x12b   :  { %v547_v45 = vpack.c.bf16 %v483_v42, %v482_v43 }
 0x12e   :  { %750 = vmatmul.mubr.bf16.gmra.mxu1 %v892_v39 }
 0x12f   :  { %757 = vmatprep.mubr.bf16.mxu1 %v545_v40 }
 0x136   :  { %758 = vmatmul.mubr.bf16.gmra.mxu1 %v893_v44 }
 0x137   :  { %765 = vmatprep.mubr.bf16.mxu1 %v547_v45 }
 0x13e   :  { %766 = vmatmul.mubr.bf16.gmra.mxu1 %v894_v50 }
 0x13f   :  { %773 = vmatprep.mubr.bf16.mxu1 %v549_v51 }
 0x146   :  { %774 = vmatmul.mubr.bf16.gmra.mxu1 %v895_v52 }
 0x1d6   :  { %v928_v53 = vpop.f32.mrf.mxu0 }
 0x1d8   :  { %v929_v54 = vpop.f32.mrf.mxu0 }
 0x1d9   :  { %v930_v55 = vadd.f32 %v929_v54, %v928_v53 }
 0x1da   :  { %v931_v57 = vpop.f32.mrf.mxu0 }
 0x1db   :  { %v720_v58 = vadd.f32 %v930_v55, %v1304_v56 }
 0x1dc   :  { %v932_v59 = vpop.f32.mrf.mxu0 }
 0x1dd   :  { %v782_v60 = vmax.f32 %v720_v58, 0.0  ;;  %v933_v61 = vadd.f32 %v932_v59, %v931_v57 }
 0x1de   :  { %v940_v62 = vpop.f32.mrf.mxu1  ;;  %v934_v63 = vpop.f32.mrf.mxu0 }
 0x1df   :  { %798 = vst [vmem:[#allocation9] sm:$0xff] %v782_v60  ;;  %v723_v0 = vadd.f32 %v933_v61, %v1304_v56 }
 0x1e0   :  { %v941_v1 = vpop.f32.mrf.mxu1  ;;  %v935_v2 = vpop.f32.mrf.mxu0 }
 0x1e1   :  { %v942_v3 = vadd.f32 %v941_v1, %v940_v62  ;;  %v783_v4 = vmax.f32 %v723_v0, 0.0  ;;  %v936_v5 = vadd.f32 %v935_v2, %v934_v63 }
 0x1e2   :  { %v943_v6 = vpop.f32.mrf.mxu1  ;;  %v937_v7 = vpop.f32.mrf.mxu0 }
 0x1e3   :  { %v736_v8 = vadd.f32 %v942_v3, %v1304_v56  ;;  %799 = vst [vmem:[#allocation9 + $0x8] sm:$0xff] %v783_v4  ;;  %v728_v9 = vadd.f32 %v936_v5, %v1304_v56 }
 0x1e4   :  { %v944_v10 = vpop.f32.mrf.mxu1  ;;  %v938_v11 = vpop.f32.mrf.mxu0 }
 0x1e5   :  { %v786_v12 = vmax.f32 %v736_v8, 0.0  ;;  %v945_v13 = vadd.f32 %v944_v10, %v943_v6  ;;  %v784_v14 = vmax.f32 %v728_v9, 0.0  ;;  %v939_v15 = vadd.f32 %v938_v11, %v937_v7 }
 0x1e6   :  { %v946_v16 = vpop.f32.mrf.mxu1 }
 0x1e7   :  { %802 = vst [vmem:[#allocation9 + $0x20] sm:$0xff] %v786_v12  ;;  %v739_v17 = vadd.f32 %v945_v13, %v1304_v56  ;;  %800 = vst [vmem:[#allocation9 + $0x10] sm:$0xff] %v784_v14  ;;  %v731_v18 = vadd.f32 %v939_v15, %v1304_v56 }
 0x1e8   :  { %v947_v19 = vpop.f32.mrf.mxu1 }
 0x1e9   :  { %v787_v20 = vmax.f32 %v739_v17, 0.0  ;;  %v948_v21 = vadd.f32 %v947_v19, %v946_v16  ;;  %v785_v22 = vmax.f32 %v731_v18, 0.0 }
 0x1ea   :  { %v949_v23 = vpop.f32.mrf.mxu1 }
 0x1eb   :  { %803 = vst [vmem:[#allocation9 + $0x28] sm:$0xff] %v787_v20  ;;  %v744_v24 = vadd.f32 %v948_v21, %v1304_v56  ;;  %801 = vst [vmem:[#allocation9 + $0x18] sm:$0xff] %v785_v22 }
 0x1ec   :  { %v950_v25 = vpop.f32.mrf.mxu1 }
 0x1ed   :  { %v788_v26 = vmax.f32 %v744_v24, 0.0  ;;  %v951_v27 = vadd.f32 %v950_v25, %v949_v23 }
 0x1ee   :  { %v952_v28 = vpop.f32.mrf.mxu1 }
 0x1ef   :  { %804 = vst [vmem:[#allocation9 + $0x30] sm:$0xff] %v788_v26  ;;  %v747_v29 = vadd.f32 %v951_v27, %v1304_v56 }
 0x1f0   :  { %v953_v30 = vpop.f32.mrf.mxu1 }
 0x1f1   :  { %v789_v31 = vmax.f32 %v747_v29, 0.0  ;;  %v954_v32 = vadd.f32 %v953_v30, %v952_v28 }
 0x1f2   :  { %v955_v33 = vpop.f32.mrf.mxu1 }
 0x1f3   :  { %805 = vst [vmem:[#allocation9 + $0x38] sm:$0xff] %v789_v31  ;;  %v752_v34 = vadd.f32 %v954_v32, %v1304_v56 }
 0x1f4   :  { %v956_v35 = vpop.f32.mrf.mxu1 }
 0x1f5   :  { %v790_v36 = vmax.f32 %v752_v34, 0.0  ;;  %v957_v37 = vadd.f32 %v956_v35, %v955_v33 }
 0x1f6   :  { %v958_v38 = vpop.f32.mrf.mxu1 }
 0x1f7   :  { %806 = vst [vmem:[#allocation9 + $0x40] sm:$0xff] %v790_v36  ;;  %v755_v39 = vadd.f32 %v957_v37, %v1304_v56 }
 0x1f8   :  { %v959_v40 = vpop.f32.mrf.mxu1 }
 0x1f9   :  { %v791_v41 = vmax.f32 %v755_v39, 0.0  ;;  %v960_v42 = vadd.f32 %v959_v40, %v958_v38 }
 0x1fa   :  { %v961_v43 = vpop.f32.mrf.mxu1 }
 0x1fb   :  { %807 = vst [vmem:[#allocation9 + $0x48] sm:$0xff] %v791_v41  ;;  %v760_v44 = vadd.f32 %v960_v42, %v1304_v56 }
 0x1fc   :  { %v962_v45 = vpop.f32.mrf.mxu1 }
 0x1fd   :  { %v792_v46 = vmax.f32 %v760_v44, 0.0  ;;  %v963_v47 = vadd.f32 %v962_v45, %v961_v43 }
 0x1fe   :  { %v964_v48 = vpop.f32.mrf.mxu1 }
 0x1ff   :  { %808 = vst [vmem:[#allocation9 + $0x50] sm:$0xff] %v792_v46  ;;  %v763_v49 = vadd.f32 %v963_v47, %v1304_v56 }
 0x200   :  { %v965_v50 = vpop.f32.mrf.mxu1 }
 0x201   :  { %v793_v51 = vmax.f32 %v763_v49, 0.0  ;;  %v966_v52 = vadd.f32 %v965_v50, %v964_v48 }
 0x202   :  { %v967_v53 = vpop.f32.mrf.mxu1 }
 0x203   :  { %809 = vst [vmem:[#allocation9 + $0x58] sm:$0xff] %v793_v51  ;;  %v768_v54 = vadd.f32 %v966_v52, %v1304_v56 }
 0x204   :  { %v968_v55 = vpop.f32.mrf.mxu1 }
 0x205   :  { %v794_v57 = vmax.f32 %v768_v54, 0.0  ;;  %v969_v58 = vadd.f32 %v968_v55, %v967_v53 }
 0x206   :  { %v970_v59 = vpop.f32.mrf.mxu1 }
 0x207   :  { %810 = vst [vmem:[#allocation9 + $0x60] sm:$0xff] %v794_v57  ;;  %v771_v60 = vadd.f32 %v969_v58, %v1304_v56 }
 0x208   :  { %v971_v61 = vpop.f32.mrf.mxu1 }
 0x209   :  { %v795_v62 = vmax.f32 %v771_v60, 0.0  ;;  %v972_v63 = vadd.f32 %v971_v61, %v970_v59 }
 0x20a   :  { %v973_v0 = vpop.f32.mrf.mxu1 }
 0x20b   :  { %811 = vst [vmem:[#allocation9 + $0x68] sm:$0xff] %v795_v62  ;;  %v776_v1 = vadd.f32 %v972_v63, %v1304_v56 }
 0x20c   :  { %v974_v2 = vpop.f32.mrf.mxu1 }
 0x20d   :  { %v796_v3 = vmax.f32 %v776_v1, 0.0  ;;  %v975_v4 = vadd.f32 %v974_v2, %v973_v0 }
 0x20f   :  { %812 = vst [vmem:[#allocation9 + $0x70] sm:$0xff] %v796_v3  ;;  %v779_v5 = vadd.f32 %v975_v4, %v1304_v56 }
 0x211   :  { %v797_v6 = vmax.f32 %v779_v5, 0.0 }
 0x213   :  { %813 = vst [vmem:[#allocation9 + $0x78] sm:$0xff] %v797_v6 }
 0x214   :  { %1130 = shalt.err (!%p1127_p5)
}
 0x215   :  { %825 = dma.vmem_to_hbm [thread:$0]  %s820_s27, 2048, %s1334_s6, [#allocation5], %s1149_s7, %s1149_s7, %s1150_s8  }
 0x216   :  { %1143 = dma.done.wait [#allocation5], 2048  }
 0x217   :  { %1144 = vsyncadd [#allocation5], 4294965248 }
 0x218   :  { %829 = vsyncpa [#allocation4], 1 }
 0x219   :  { %830 = vsyncpa [#allocation7], 1 }
 0x21a   :  { %831 = vsyncpa [#allocation5], 1 }

</bundles_post_ra>
